<compile_context>
chip_gen: v5e
topology: v5e:2x2
jax: 0.10.0
libtpu: 0.0.40
codegen_flags: <defaults>
</compile_context>

<pallas_src>
import functools

import jax
import jax.numpy as jnp
from jax.experimental import pallas as pl
from jax.experimental.pallas import tpu as pltpu

LANE = 128     # lane width / padding multiple for hidden dims
SUBLANE = 8    # sublane multiple for the batch (row) tile


def _round_up(n, m):
    return ((n + m - 1) // m) * m


def _pick_tb(batch, desired=512):
    """Row tile: multiple of 8, capped at `desired`, and clamped to ~batch/2 so
    the grid keeps >= 2 steps (v7x megacore) without inflating padded rows."""
    half = _round_up(max(1, (batch + 1) // 2), SUBLANE)
    return max(SUBLANE, min(desired, half))


def _autoencoder_kernel(
    x_ref,
    w1_ref, b1_ref,
    w2_ref, b2_ref,
    w34_ref, b34_ref,   # folded enc-L3 / dec-L1 (no nonlinearity between them)
    w5_ref, b5_ref,
    w6_ref, b6_ref,
    out_ref,
):
    def dense(h_bf16, w_ref, b_ref):
        # bf16 x bf16 -> f32 accumulation on the MXU, bias added in f32.
        return jnp.dot(h_bf16, w_ref[...],
                       preferred_element_type=jnp.float32) + b_ref[...]

    # x arrives at its real (unpadded) width in f32; cast to bf16 for the MXU.
    h = x_ref[...].astype(jnp.bfloat16)

    h = jnp.maximum(dense(h, w1_ref, b1_ref), 0.0).astype(jnp.bfloat16)    # enc L1 + ReLU
    h = jnp.maximum(dense(h, w2_ref, b2_ref), 0.0).astype(jnp.bfloat16)    # enc L2 + ReLU
    h = jnp.maximum(dense(h, w34_ref, b34_ref), 0.0).astype(jnp.bfloat16)  # enc L3 ∘ dec L1 + ReLU
    h = jnp.maximum(dense(h, w5_ref, b5_ref), 0.0).astype(jnp.bfloat16)    # dec L2 + ReLU
    y = dense(h, w6_ref, b6_ref)                                           # dec L3 (real width)

    out_ref[...] = jax.nn.sigmoid(y).astype(out_ref.dtype)


def _prepare_params(params, input_dim):
    """Fold enc-L3/dec-L1, zero-pad hidden dims to 128 lanes, cast weights to
    bf16 (biases stay f32).  Weights are stored (in, out) = PyTorch weight.T."""
    w1, b1, w2, b2, w3, b3, w4, b4, w5, b5, w6, b6 = params

    # Fold the two adjacent linears around the latent (f32, highest precision).
    hi = jax.lax.Precision.HIGHEST
    w34 = jnp.dot(w3, w4, precision=hi)               # (hidden//2, hidden//2)
    b34 = jnp.dot(b3, w4, precision=hi) + b4          # (1, hidden//2)

    def pad_wb(w, b, fi_pad, fo_pad):
        fi, fo = w.shape
        wp = jnp.pad(w, ((0, fi_pad - fi), (0, fo_pad - fo))).astype(jnp.bfloat16)
        bp = jnp.pad(b, ((0, 0), (0, fo_pad - b.shape[1]))).astype(jnp.float32)
        return [wp, bp]

    prepared = []
    prepared += pad_wb(w1, b1, input_dim, LANE)   # fan-in stays real (matches x)
    prepared += pad_wb(w2, b2, LANE, LANE)
    prepared += pad_wb(w34, b34, LANE, LANE)
    prepared += pad_wb(w5, b5, LANE, LANE)
    prepared += pad_wb(w6, b6, LANE, input_dim)   # fan-out stays real (matches out)
    return prepared


@jax.jit
def autoencoder_forward(x, params):
    """x: (batch, input_dim) f32; params: flat tuple (w1,b1,...,w6,b6) with
    weights stored (in, out) = PyTorch weight.T and biases (1, out)."""
    batch, input_dim = x.shape
    hidden_dim = params[0].shape[1]
    latent_dim = params[4].shape[1]

    prepared = _prepare_params(params, input_dim)

    tb = _pick_tb(batch)
    batch_p = _round_up(batch, tb)
    num_steps = batch_p // tb

    # No-op when batch is already tile-aligned (the common case).
    x_p = jnp.pad(x, ((0, batch_p - batch), (0, 0)))

    x_spec = pl.BlockSpec((tb, input_dim), lambda i: (i, 0))
    out_spec = pl.BlockSpec((tb, input_dim), lambda i: (i, 0))
    param_specs = [pl.BlockSpec(p.shape, lambda i: (0, 0)) for p in prepared]

    # Cost estimate from the REAL module dims (advisory, for XLA's scheduler).
    real_dims = [
        (input_dim, hidden_dim), (hidden_dim, hidden_dim // 2),
        (hidden_dim // 2, latent_dim), (latent_dim, hidden_dim // 2),
        (hidden_dim // 2, hidden_dim), (hidden_dim, input_dim),
    ]
    flops = 2 * batch * sum(fi * fo for fi, fo in real_dims)
    param_bytes = sum(4 * (fi * fo + fo) for fi, fo in real_dims)
    cost = pl.CostEstimate(
        flops=flops,
        transcendentals=batch * input_dim,          # sigmoid on the real output
        bytes_accessed=2 * batch * input_dim * 4 + param_bytes,
    )

    out_p = pl.pallas_call(
        _autoencoder_kernel,
        out_shape=jax.ShapeDtypeStruct((batch_p, input_dim), jnp.float32),
        grid=(num_steps,),
        in_specs=[x_spec] + param_specs,
        out_specs=out_spec,
        compiler_params=pltpu.CompilerParams(
            dimension_semantics=("parallel",),
        ),
        cost_estimate=cost,
    )(x_p, *prepared)

    return out_p[:batch, :]   # no-op when batch_p == batch


def init_params(key, input_dim, hidden_dim, latent_dim):
    """Deterministic init.  Weights stored (in, out) = PyTorch weight.T."""
    dims = [
        (input_dim, hidden_dim),
        (hidden_dim, hidden_dim // 2),
        (hidden_dim // 2, latent_dim),
        (latent_dim, hidden_dim // 2),
        (hidden_dim // 2, hidden_dim),
        (hidden_dim, input_dim),
    ]
    params = []
    for (fan_in, fan_out) in dims:
        key, kw, kb = jax.random.split(key, 3)
        bound = 1.0 / jnp.sqrt(fan_in)  # mimic PyTorch Linear default init
        w = jax.random.uniform(kw, (fan_in, fan_out), jnp.float32, -bound, bound)
        b = jax.random.uniform(kb, (1, fan_out), jnp.float32, -bound, bound)
        params += [w, b]
    return tuple(params)


def reference_forward(x, params):
    """Pure-JAX fp32 reference with the PyTorch module's (unfused) semantics."""
    w1, b1, w2, b2, w3, b3, w4, b4, w5, b5, w6, b6 = params
    h = jax.nn.relu(x @ w1 + b1)
    h = jax.nn.relu(h @ w2 + b2)
    z = h @ w3 + b3
    h = jax.nn.relu(z @ w4 + b4)
    h = jax.nn.relu(h @ w5 + b5)
    return jax.nn.sigmoid(h @ w6 + b6)


if __name__ == "__main__":
    batch, input_dim, hidden_dim, latent_dim = 256, 64, 32, 8

    key = jax.random.PRNGKey(0)
    key, kx = jax.random.split(key)
    x = jax.random.uniform(kx, (batch, input_dim), jnp.float32)
    params = init_params(key, input_dim, hidden_dim, latent_dim)

    out = autoencoder_forward(x, params)
    out = jax.block_until_ready(out)

    ref = reference_forward(x, params)
    assert out.shape == (batch, input_dim)
    # bf16 MXU operands (with f32 accumulation) -> slightly looser tolerance.
    assert jnp.allclose(out, ref, atol=2e-2, rtol=0.0), "mismatch vs reference"

    print("KERNEL_OK")
</pallas_src>

<mosaic_0001>
module attributes {stable_mosaic.version = 11 : i64} {
  func.func @_autoencoder_kernel(%arg0: i32, %arg1: memref<128x64xf32, #tpu.memory_space<vmem>>, %arg2: memref<64x128xbf16, #tpu.memory_space<vmem>>, %arg3: memref<1x128xf32, #tpu.memory_space<vmem>>, %arg4: memref<128x128xbf16, #tpu.memory_space<vmem>>, %arg5: memref<1x128xf32, #tpu.memory_space<vmem>>, %arg6: memref<128x128xbf16, #tpu.memory_space<vmem>>, %arg7: memref<1x128xf32, #tpu.memory_space<vmem>>, %arg8: memref<128x128xbf16, #tpu.memory_space<vmem>>, %arg9: memref<1x128xf32, #tpu.memory_space<vmem>>, %arg10: memref<128x64xbf16, #tpu.memory_space<vmem>>, %arg11: memref<1x64xf32, #tpu.memory_space<vmem>>, %arg12: memref<128x64xf32, #tpu.memory_space<vmem>>) attributes {dimension_semantics = [#tpu.dimension_semantics<parallel>], iteration_bounds = array<i64: 2>, scalar_prefetch = 0 : i64, scratch_operands = 0 : i64, tpu.core_type = #tpu.core_type<tc>, window_params = [{transform_indices = @transform_0, window_bounds = array<i64: 128, 64>}, {pipeline_mode = #tpu.pipeline_mode<synchronous>, transform_indices = @transform_1, window_bounds = array<i64: 64, 128>}, {pipeline_mode = #tpu.pipeline_mode<synchronous>, transform_indices = @transform_2, window_bounds = array<i64: 1, 128>}, {pipeline_mode = #tpu.pipeline_mode<synchronous>, transform_indices = @transform_3, window_bounds = array<i64: 128, 128>}, {pipeline_mode = #tpu.pipeline_mode<synchronous>, transform_indices = @transform_4, window_bounds = array<i64: 1, 128>}, {pipeline_mode = #tpu.pipeline_mode<synchronous>, transform_indices = @transform_5, window_bounds = array<i64: 128, 128>}, {pipeline_mode = #tpu.pipeline_mode<synchronous>, transform_indices = @transform_6, window_bounds = array<i64: 1, 128>}, {pipeline_mode = #tpu.pipeline_mode<synchronous>, transform_indices = @transform_7, window_bounds = array<i64: 128, 128>}, {pipeline_mode = #tpu.pipeline_mode<synchronous>, transform_indices = @transform_8, window_bounds = array<i64: 1, 128>}, {pipeline_mode = #tpu.pipeline_mode<synchronous>, transform_indices = @transform_9, window_bounds = array<i64: 128, 64>}, {pipeline_mode = #tpu.pipeline_mode<synchronous>, transform_indices = @transform_10, window_bounds = array<i64: 1, 64>}, {transform_indices = @transform_11, window_bounds = array<i64: 128, 64>}]} {
    %c0 = arith.constant 0 : index
    %c0_0 = arith.constant 0 : index
    %0 = vector.load %arg1[%c0, %c0_0] : memref<128x64xf32, #tpu.memory_space<vmem>>, vector<128x64xf32>
    %1 = arith.truncf %0 : vector<128x64xf32> to vector<128x64xbf16>
    %c0_1 = arith.constant 0 : index
    %c0_2 = arith.constant 0 : index
    %2 = vector.load %arg2[%c0_1, %c0_2] : memref<64x128xbf16, #tpu.memory_space<vmem>>, vector<64x128xbf16>
    %cst = arith.constant dense<0.000000e+00> : vector<128x128xf32>
    %3 = tpu.matmul %1, %2, %cst {dimension_numbers = #tpu.dot_dimension_numbers<[1], [0], [0], [1], [0, 0, 1, 1], [], []>} : vector<128x64xbf16>, vector<64x128xbf16>, vector<128x128xf32> -> vector<128x128xf32>
    %c0_3 = arith.constant 0 : index
    %c0_4 = arith.constant 0 : index
    %4 = vector.load %arg3[%c0_3, %c0_4] : memref<1x128xf32, #tpu.memory_space<vmem>>, vector<1x128xf32>
    %5 = vector.broadcast %4 : vector<1x128xf32> to vector<128x128xf32>
    %6 = arith.addf %3, %5 : vector<128x128xf32>
    %cst_5 = arith.constant 0.000000e+00 : f32
    %7 = vector.broadcast %cst_5 : f32 to vector<128x128xf32>
    %8 = arith.maximumf %6, %7 : vector<128x128xf32>
    %9 = arith.truncf %8 : vector<128x128xf32> to vector<128x128xbf16>
    %c0_6 = arith.constant 0 : index
    %c0_7 = arith.constant 0 : index
    %10 = vector.load %arg4[%c0_6, %c0_7] : memref<128x128xbf16, #tpu.memory_space<vmem>>, vector<128x128xbf16>
    %cst_8 = arith.constant dense<0.000000e+00> : vector<128x128xf32>
    %11 = tpu.matmul %9, %10, %cst_8 {dimension_numbers = #tpu.dot_dimension_numbers<[1], [0], [0], [1], [0, 0, 1, 1], [], []>} : vector<128x128xbf16>, vector<128x128xbf16>, vector<128x128xf32> -> vector<128x128xf32>
    %c0_9 = arith.constant 0 : index
    %c0_10 = arith.constant 0 : index
    %12 = vector.load %arg5[%c0_9, %c0_10] : memref<1x128xf32, #tpu.memory_space<vmem>>, vector<1x128xf32>
    %13 = vector.broadcast %12 : vector<1x128xf32> to vector<128x128xf32>
    %14 = arith.addf %11, %13 : vector<128x128xf32>
    %cst_11 = arith.constant 0.000000e+00 : f32
    %15 = vector.broadcast %cst_11 : f32 to vector<128x128xf32>
    %16 = arith.maximumf %14, %15 : vector<128x128xf32>
    %17 = arith.truncf %16 : vector<128x128xf32> to vector<128x128xbf16>
    %c0_12 = arith.constant 0 : index
    %c0_13 = arith.constant 0 : index
    %18 = vector.load %arg6[%c0_12, %c0_13] : memref<128x128xbf16, #tpu.memory_space<vmem>>, vector<128x128xbf16>
    %cst_14 = arith.constant dense<0.000000e+00> : vector<128x128xf32>
    %19 = tpu.matmul %17, %18, %cst_14 {dimension_numbers = #tpu.dot_dimension_numbers<[1], [0], [0], [1], [0, 0, 1, 1], [], []>} : vector<128x128xbf16>, vector<128x128xbf16>, vector<128x128xf32> -> vector<128x128xf32>
    %c0_15 = arith.constant 0 : index
    %c0_16 = arith.constant 0 : index
    %20 = vector.load %arg7[%c0_15, %c0_16] : memref<1x128xf32, #tpu.memory_space<vmem>>, vector<1x128xf32>
    %21 = vector.broadcast %20 : vector<1x128xf32> to vector<128x128xf32>
    %22 = arith.addf %19, %21 : vector<128x128xf32>
    %cst_17 = arith.constant 0.000000e+00 : f32
    %23 = vector.broadcast %cst_17 : f32 to vector<128x128xf32>
    %24 = arith.maximumf %22, %23 : vector<128x128xf32>
    %25 = arith.truncf %24 : vector<128x128xf32> to vector<128x128xbf16>
    %c0_18 = arith.constant 0 : index
    %c0_19 = arith.constant 0 : index
    %26 = vector.load %arg8[%c0_18, %c0_19] : memref<128x128xbf16, #tpu.memory_space<vmem>>, vector<128x128xbf16>
    %cst_20 = arith.constant dense<0.000000e+00> : vector<128x128xf32>
    %27 = tpu.matmul %25, %26, %cst_20 {dimension_numbers = #tpu.dot_dimension_numbers<[1], [0], [0], [1], [0, 0, 1, 1], [], []>} : vector<128x128xbf16>, vector<128x128xbf16>, vector<128x128xf32> -> vector<128x128xf32>
    %c0_21 = arith.constant 0 : index
    %c0_22 = arith.constant 0 : index
    %28 = vector.load %arg9[%c0_21, %c0_22] : memref<1x128xf32, #tpu.memory_space<vmem>>, vector<1x128xf32>
    %29 = vector.broadcast %28 : vector<1x128xf32> to vector<128x128xf32>
    %30 = arith.addf %27, %29 : vector<128x128xf32>
    %cst_23 = arith.constant 0.000000e+00 : f32
    %31 = vector.broadcast %cst_23 : f32 to vector<128x128xf32>
    %32 = arith.maximumf %30, %31 : vector<128x128xf32>
    %33 = arith.truncf %32 : vector<128x128xf32> to vector<128x128xbf16>
    %c0_24 = arith.constant 0 : index
    %c0_25 = arith.constant 0 : index
    %34 = vector.load %arg10[%c0_24, %c0_25] : memref<128x64xbf16, #tpu.memory_space<vmem>>, vector<128x64xbf16>
    %cst_26 = arith.constant dense<0.000000e+00> : vector<128x64xf32>
    %35 = tpu.matmul %33, %34, %cst_26 {dimension_numbers = #tpu.dot_dimension_numbers<[1], [0], [0], [1], [0, 0, 1, 1], [], []>} : vector<128x128xbf16>, vector<128x64xbf16>, vector<128x64xf32> -> vector<128x64xf32>
    %c0_27 = arith.constant 0 : index
    %c0_28 = arith.constant 0 : index
    %36 = vector.load %arg11[%c0_27, %c0_28] : memref<1x64xf32, #tpu.memory_space<vmem>>, vector<1x64xf32>
    %37 = vector.broadcast %36 : vector<1x64xf32> to vector<128x64xf32>
    %38 = arith.addf %35, %37 : vector<128x64xf32>
    %39 = arith.negf %38 : vector<128x64xf32>
    %40 = math.exp %39 : vector<128x64xf32>
    %cst_29 = arith.constant 1.000000e+00 : f32
    %41 = vector.broadcast %cst_29 : f32 to vector<128x64xf32>
    %42 = arith.addf %41, %40 : vector<128x64xf32>
    %43 = arith.divf %41, %42 : vector<128x64xf32>
    %c0_30 = arith.constant 0 : index
    %c0_31 = arith.constant 0 : index
    %44 = vector.load %arg12[%c0_30, %c0_31] : memref<128x64xf32, #tpu.memory_space<vmem>>, vector<128x64xf32>
    tpu.vector_store %arg12[%c0_30, %c0_31], %43 {strides = array<i32>} : memref<128x64xf32, #tpu.memory_space<vmem>>, vector<128x64xf32>,
    return
  }
  func.func @transform_0(%arg0: i32) -> (i32, i32) {
    %c0_i32 = arith.constant 0 : i32
    %c0_i32_0 = arith.constant 0 : i32
    return %arg0, %c0_i32 : i32, i32
  }
  func.func @transform_1(%arg0: i32) -> (i32, i32) {
    %c0_i32 = arith.constant 0 : i32
    %c0_i32_0 = arith.constant 0 : i32
    %c0_i32_1 = arith.constant 0 : i32
    return %c0_i32, %c0_i32_0 : i32, i32
  }
  func.func @transform_2(%arg0: i32) -> (i32, i32) {
    %c0_i32 = arith.constant 0 : i32
    %c0_i32_0 = arith.constant 0 : i32
    %c0_i32_1 = arith.constant 0 : i32
    return %c0_i32, %c0_i32_0 : i32, i32
  }
  func.func @transform_3(%arg0: i32) -> (i32, i32) {
    %c0_i32 = arith.constant 0 : i32
    %c0_i32_0 = arith.constant 0 : i32
    %c0_i32_1 = arith.constant 0 : i32
    return %c0_i32, %c0_i32_0 : i32, i32
  }
  func.func @transform_4(%arg0: i32) -> (i32, i32) {
    %c0_i32 = arith.constant 0 : i32
    %c0_i32_0 = arith.constant 0 : i32
    %c0_i32_1 = arith.constant 0 : i32
    return %c0_i32, %c0_i32_0 : i32, i32
  }
  func.func @transform_5(%arg0: i32) -> (i32, i32) {
    %c0_i32 = arith.constant 0 : i32
    %c0_i32_0 = arith.constant 0 : i32
    %c0_i32_1 = arith.constant 0 : i32
    return %c0_i32, %c0_i32_0 : i32, i32
  }
  func.func @transform_6(%arg0: i32) -> (i32, i32) {
    %c0_i32 = arith.constant 0 : i32
    %c0_i32_0 = arith.constant 0 : i32
    %c0_i32_1 = arith.constant 0 : i32
    return %c0_i32, %c0_i32_0 : i32, i32
  }
  func.func @transform_7(%arg0: i32) -> (i32, i32) {
    %c0_i32 = arith.constant 0 : i32
    %c0_i32_0 = arith.constant 0 : i32
    %c0_i32_1 = arith.constant 0 : i32
    return %c0_i32, %c0_i32_0 : i32, i32
  }
  func.func @transform_8(%arg0: i32) -> (i32, i32) {
    %c0_i32 = arith.constant 0 : i32
    %c0_i32_0 = arith.constant 0 : i32
    %c0_i32_1 = arith.constant 0 : i32
    return %c0_i32, %c0_i32_0 : i32, i32
  }
  func.func @transform_9(%arg0: i32) -> (i32, i32) {
    %c0_i32 = arith.constant 0 : i32
    %c0_i32_0 = arith.constant 0 : i32
    %c0_i32_1 = arith.constant 0 : i32
    return %c0_i32, %c0_i32_0 : i32, i32
  }
  func.func @transform_10(%arg0: i32) -> (i32, i32) {
    %c0_i32 = arith.constant 0 : i32
    %c0_i32_0 = arith.constant 0 : i32
    %c0_i32_1 = arith.constant 0 : i32
    return %c0_i32, %c0_i32_0 : i32, i32
  }
  func.func @transform_11(%arg0: i32) -> (i32, i32) {
    %c0_i32 = arith.constant 0 : i32
    %c0_i32_0 = arith.constant 0 : i32
    return %arg0, %c0_i32 : i32, i32
  }
}

</mosaic_0001>

<bundles_post_ra>
// kernel: autoencoder_forward.1
= control target key start
LH: loop header
LB: loop body
LE: loop exit
PB: predicated region body
PF: predicated region fallthrough
CT: control target
= control target key end

     0   :  { %s1837_s17 = smov 0   ;;  %s2116_s0 = inlined_call_operand.vmem [shape: f32[256,64], index: 0, kind: input, shape index: {}]   ;;  %s2117_s1 = inlined_call_operand.vmem [shape: bf16[64,128], index: 1, kind: input, shape index: {}]   ;;  %s2118_s2 = inlined_call_operand.vmem [shape: f32[1,128], index: 2, kind: input, shape index: {}]   ;;  %s2119_s3 = inlined_call_operand.vmem [shape: bf16[128,128], index: 3, kind: input, shape index: {}]   ;;  %s2120_s4 = inlined_call_operand.vmem [shape: f32[1,128], index: 4, kind: input, shape index: {}]   ;;  %s2121_s5 = inlined_call_operand.vmem [shape: bf16[128,128], index: 5, kind: input, shape index: {}]   ;;  %s2122_s6 = inlined_call_operand.vmem [shape: f32[1,128], index: 6, kind: input, shape index: {}]   ;;  %s2123_s7 = inlined_call_operand.vmem [shape: bf16[128,128], index: 7, kind: input, shape index: {}]   ;;  %s2124_s8 = inlined_call_operand.vmem [shape: f32[1,128], index: 8, kind: input, shape index: {}]   ;;  %s2125_s9 = inlined_call_operand.vmem [shape: bf16[128,64], index: 9, kind: input, shape index: {}]   ;;  %s2126_s10 = inlined_call_operand.vmem [shape: f32[1,64], index: 10, kind: input, shape index: {}]   ;;  %s2127_s11 = inlined_call_operand.vmem [shape: f32[256,64], index: 11, kind: output, shape index: {}]  }
   0x1 LB: > { %s1465_s18 = sadd.s32 4294967295, %s1775_s17   ;;  %p1469_p0 = scmp.ge.s32.totalorder %s1775_s17, 1  ;;  %s1775_s17 = sphi %s1837_s17, %s21_s17  }
   0x2   : > { %p338_p1 = scmp.lt.s32.totalorder %s1775_s17, 3 }
   0x4   : > { %p339_p2 = pnand %p1469_p0, %p338_p1 }
   0x5   : > { %s1470_s21 = sshll.u32 (!%p339_p2), %s1465_s18, 4 }
   0x6   : > { %342 = sbr.rel (%p339_p2) target bundleno = 876 (0x36c), region = 64  ;;  %p379_p3 = scmp.lt.s32.totalorder (!%p339_p2), %s1470_s21, 31 }
   0xb   : > { %v1647_v0 = vld [vmem:[%s2117_s1 + $0x18] sm:$0xff]  ;;  %v1646_v1 = vld [vmem:[%s2117_s1 + $0x10] sm:$0xff]  ;;  %s2129_s21 = smov (!%p379_p3, %s1470_s21), 31  ;;  %v1645_v2 = vld [vmem:[%s2117_s1 + $0x8] sm:$0xff]  ;;  %vm451_vm0 = vcmask 523264  }
   0xc   : > { %480 = vmatpush.bf16.msra.mxu0 %v1647_v0  ;;  %1680 = vmatpush.bf16.msra.mxu1 %v1647_v0  ;;  %s1471_s24 = sshll.u32 %s2129_s21, 3  ;;  %v1644_v3 = vld [vmem:[%s2117_s1] sm:$0xff]  ;;  %v1655_v15 = vld [vmem:[%s2119_s3 + $0x38] sm:$0xff]  ;;  %v1654_v17 = vld [vmem:[%s2119_s3 + $0x30] sm:$0xff] }
   0xd   : > { %1681 = vmatpush.bf16.msra.mxu2 %v1647_v0  ;;  %1682 = vmatpush.bf16.msra.mxu3 %v1647_v0  ;;  %s1862_s29 = scalar_lea.vmem %s2116_s0, %s1471_s24  ;;  %v1653_v18 = vld [vmem:[%s2119_s3 + $0x28] sm:$0xff]  ;;  %v1652_v25 = vld [vmem:[%s2119_s3 + $0x20] sm:$0xff]  ;;  %v1651_v29 = vld [vmem:[%s2119_s3 + $0x18] sm:$0xff]  ;;  %s2067_s28 = scalar_lea.vmem %s2127_s11, %s1471_s24 }
   0xe   : > { %v391_v4 = vld [vmem:[%s1862_s29] sm:$0xff]  ;;  %v392_v5 = vld [vmem:[%s1862_s29 + $0x8] sm:$0xff]  ;;  %v405_v13 = vld [vmem:[%s1862_s29 + $0x70] sm:$0xff] }
   0xf   : > { %v395_v6 = vld [vmem:[%s1862_s29 + $0x20] sm:$0xff]  ;;  %v396_v7 = vld [vmem:[%s1862_s29 + $0x28] sm:$0xff]  ;;  %v407_v10 = vpack.c.bf16 %v392_v5, %v391_v4  ;;  %v406_v14 = vld [vmem:[%s1862_s29 + $0x78] sm:$0xff] }
  0x10   : > { %481 = vmatpush.bf16.msra.mxu0 %v1646_v1  ;;  %1683 = vmatpush.bf16.msra.mxu1 %v1646_v1  ;;  %v399_v8 = vld [vmem:[%s1862_s29 + $0x40] sm:$0xff]  ;;  %v400_v9 = vld [vmem:[%s1862_s29 + $0x48] sm:$0xff]  ;;  %v409_v11 = vpack.c.bf16 %v396_v7, %v395_v6  ;;  %v414_v16 = vpack.c.bf16 %v406_v14, %v405_v13  ;;  %v393_v19 = vld [vmem:[%s1862_s29 + $0x10] sm:$0xff] }
  0x11   : > { %1684 = vmatpush.bf16.msra.mxu2 %v1646_v1  ;;  %1685 = vmatpush.bf16.msra.mxu3 %v1646_v1  ;;  %v411_v12 = vpack.c.bf16 %v400_v9, %v399_v8  ;;  %v394_v20 = vld [vmem:[%s1862_s29 + $0x18] sm:$0xff]  ;;  %v397_v21 = vld [vmem:[%s1862_s29 + $0x30] sm:$0xff]  ;;  %v403_v30 = vld [vmem:[%s1862_s29 + $0x60] sm:$0xff] }
  0x12   : > { %v398_v22 = vld [vmem:[%s1862_s29 + $0x38] sm:$0xff]  ;;  %v401_v23 = vld [vmem:[%s1862_s29 + $0x50] sm:$0xff]  ;;  %v408_v26 = vpack.c.bf16 %v394_v20, %v393_v19  ;;  %v404_v31 = vld [vmem:[%s1862_s29 + $0x68] sm:$0xff] }
  0x13   : > { %v402_v24 = vld [vmem:[%s1862_s29 + $0x58] sm:$0xff]  ;;  %v410_v27 = vpack.c.bf16 %v398_v22, %v397_v21  ;;  %v413_v32 = vpack.c.bf16 %v404_v31, %v403_v30  ;;  %v1650_v33 = vld [vmem:[%s2119_s3 + $0x10] sm:$0xff]  ;;  %v1649_v34 = vld [vmem:[%s2119_s3 + $0x8] sm:$0xff] }
  0x14   : > { %482 = vmatpush.bf16.msra.mxu0 %v1645_v2  ;;  %1686 = vmatpush.bf16.msra.mxu1 %v1645_v2  ;;  %v412_v28 = vpack.c.bf16 %v402_v24, %v401_v23  ;;  %v1648_v35 = vld [vmem:[%s2119_s3] sm:$0xff]  ;;  %v1659_v20 = vld [vmem:[%s2121_s5 + $0x18] sm:$0xff]  ;;  %v1658_v21 = vld [vmem:[%s2121_s5 + $0x10] sm:$0xff] }
  0x15   : > { %1687 = vmatpush.bf16.msra.mxu2 %v1645_v2  ;;  %1688 = vmatpush.bf16.msra.mxu3 %v1645_v2  ;;  %v1918_v37 = vld [vmem:[%s2118_s2] ss:$0 sm:$0xff] }
  0x18   : > { %483 = vmatpush.bf16.msra.mxu0 %v1644_v3  ;;  %1689 = vmatpush.bf16.msra.mxu1 %v1644_v3 }
  0x19   : > { %1690 = vmatpush.bf16.msra.mxu2 %v1644_v3  ;;  %1691 = vmatpush.bf16.msra.mxu3 %v1644_v3  ;;  %v1663_v3 = vld [vmem:[%s2121_s5 + $0x38] sm:$0xff] }
  0x1b   : > { %1490 = vmatmul.msk.bf16.vlgmr.msra.gmra.mxu0 %vm451_vm0, %v407_v10  ;;  %1492 = vmatmul.msk.bf16.vlgmr.msra.gmra.mxu1 %vm451_vm0, %v409_v11  ;;  %v1662_v11 = vld [vmem:[%s2121_s5 + $0x30] sm:$0xff] }
  0x1c   : > { %1494 = vmatmul.msk.bf16.vlgmr.msra.gmra.mxu2 %vm451_vm0, %v411_v12  ;;  %617 = vmatpush.bf16.msrb.mxu1 %v1655_v15  ;;  %v1661_v12 = vld [vmem:[%s2121_s5 + $0x28] sm:$0xff]  ;;  %v1660_v15 = vld [vmem:[%s2121_s5 + $0x20] sm:$0xff] }
  0x1d   : > { %1497 = vmatmul.msk.bf16.vlgmr.msra.gmra.mxu3 %vm451_vm0, %v414_v16  ;;  %758 = vmatpush.bf16.msrb.mxu2 %v1663_v3 }
  0x20   : > { %618 = vmatpush.bf16.msrb.mxu1 %v1654_v17 }
  0x21   : > { %759 = vmatpush.bf16.msrb.mxu2 %v1662_v11 }
  0x24   : > { %619 = vmatpush.bf16.msrb.mxu1 %v1653_v18 }
  0x25   : > { %760 = vmatpush.bf16.msrb.mxu2 %v1661_v12 }
  0x28   : > { %620 = vmatpush.bf16.msrb.mxu1 %v1652_v25 }
  0x29   : > { %761 = vmatpush.bf16.msrb.mxu2 %v1660_v15 }
  0x2b   : > { %1491 = vmatmul.msk.bf16.gmra.mxu0 %vm451_vm0, %v408_v26  ;;  %1493 = vmatmul.msk.bf16.gmra.mxu1 %vm451_vm0, %v410_v27 }
  0x2c   : > { %1495 = vmatmul.msk.bf16.gmra.mxu2 %vm451_vm0, %v412_v28  ;;  %621 = vmatpush.bf16.msrb.mxu1 %v1651_v29  ;;  %v1657_v29 = vld [vmem:[%s2121_s5 + $0x8] sm:$0xff] }
  0x2d   : > { %762 = vmatpush.bf16.msrb.mxu2 %v1659_v20 }
  0x30   : > { %622 = vmatpush.bf16.msrb.mxu1 %v1650_v33  ;;  %v1656_v33 = vld [vmem:[%s2121_s5] sm:$0xff] }
  0x31   : > { %763 = vmatpush.bf16.msrb.mxu2 %v1658_v21 }
  0x34   : > { %623 = vmatpush.bf16.msrb.mxu1 %v1649_v34 }
  0x35   : > { %764 = vmatpush.bf16.msrb.mxu2 %v1657_v29  ;;  %v1666_v29 = vld [vmem:[%s2123_s7 + $0x10] sm:$0xff] }
  0x38   : > { %624 = vmatpush.bf16.msrb.mxu1 %v1648_v35 }
  0x39   : > { %765 = vmatpush.bf16.msrb.mxu2 %v1656_v33 }
  0x3c   : > { %1496 = vmatmul.msk.bf16.gmra.mxu2 %vm451_vm0, %v413_v32 }
  0x98   : > { %v485_v36 = vpop.f32.mrf.mxu0  ;;  %v495_v45 = vpop.f32.mrf.mxu1 }
  0x99   : > { %v486_v38 = vadd.f32 %v1918_v37, %v485_v36  ;;  %v496_v53 = vadd.f32 %v1918_v37, %v495_v45 }
  0x9b   : > { %v525_v41 = vmax.f32 %v486_v38, 0.0  ;;  %v529_v56 = vmax.f32 %v496_v53, 0.0 }
  0x9f   : > { %v505_v59 = vpop.f32.mrf.mxu2 }
  0xa0   : > { %v487_v39 = vpop.f32.mrf.mxu0  ;;  %v497_v52 = vpop.f32.mrf.mxu1  ;;  %v506_v5 = vadd.f32 %v1918_v37, %v505_v59 }
  0xa1   : > { %v488_v40 = vadd.f32 %v1918_v37, %v487_v39  ;;  %v498_v54 = vadd.f32 %v1918_v37, %v497_v52  ;;  %v520_v25 = vpop.f32.mrf.mxu3  ;;  %v1963_v39 = vld [vmem:[%s2120_s4] ss:$0 sm:$0xff] }
  0xa2   : > { %v533_v7 = vmax.f32 %v506_v5, 0.0  ;;  %v521_v31 = vadd.f32 %v1918_v37, %v520_v25 }
  0xa3   : > { %v526_v42 = vmax.f32 %v488_v40, 0.0  ;;  %v530_v57 = vmax.f32 %v498_v54, 0.0 }
  0xa4   : > { %v539_v34 = vmax.f32 %v521_v31, 0.0 }
  0xa5   : > { %v541_v43 = vpack.c.bf16 %v526_v42, %v525_v41  ;;  %v543_v58 = vpack.c.bf16 %v530_v57, %v529_v56 }
  0xa7   : > { %625 = vmatmul.bf16.vlgmr.msrb.gmra.mxu1 %v541_v43  ;;  %v507_v1 = vpop.f32.mrf.mxu2 }
  0xa8   : > { %v490_v44 = vpop.f32.mrf.mxu0  ;;  %v500_v55 = vpop.f32.mrf.mxu1  ;;  %v508_v6 = vadd.f32 %v1918_v37, %v507_v1 }
  0xa9   : > { %v491_v46 = vadd.f32 %v1918_v37, %v490_v44  ;;  %v501_v61 = vadd.f32 %v1918_v37, %v500_v55  ;;  %v522_v30 = vpop.f32.mrf.mxu3 }
  0xaa   : > { %v534_v8 = vmax.f32 %v508_v6, 0.0  ;;  %v523_v32 = vadd.f32 %v1918_v37, %v522_v30 }
  0xab   : > { %v527_v49 = vmax.f32 %v491_v46, 0.0  ;;  %v531_v63 = vmax.f32 %v501_v61, 0.0 }
  0xac   : > { %v545_v9 = vpack.c.bf16 %v534_v8, %v533_v7  ;;  %v540_v35 = vmax.f32 %v523_v32, 0.0  ;;  %v1665_v32 = vld [vmem:[%s2123_s7 + $0x8] sm:$0xff] }
  0xae   : > { %v548_v36 = vpack.c.bf16 %v540_v35, %v539_v34 }
  0xaf   : > { %v510_v4 = vpop.f32.mrf.mxu2 }
  0xb0   : > { %v492_v47 = vpop.f32.mrf.mxu0  ;;  %v502_v60 = vpop.f32.mrf.mxu1  ;;  %v511_v13 = vadd.f32 %v1918_v37, %v510_v4 }
  0xb1   : > { %v493_v48 = vadd.f32 %v1918_v37, %v492_v47  ;;  %v503_v62 = vadd.f32 %v1918_v37, %v502_v60 }
  0xb2   : > { %v535_v17 = vmax.f32 %v511_v13, 0.0 }
  0xb3   : > { %v528_v50 = vmax.f32 %v493_v48, 0.0  ;;  %v532_v0 = vmax.f32 %v503_v62, 0.0 }
  0xb5   : > { %v542_v51 = vpack.c.bf16 %v528_v50, %v527_v49  ;;  %v544_v2 = vpack.c.bf16 %v532_v0, %v531_v63 }
  0xb7   : > { %630 = vmatmul.bf16.gmra.mxu1 %v542_v51  ;;  %v512_v10 = vpop.f32.mrf.mxu2 }
  0xb8   : > { %v513_v14 = vadd.f32 %v1918_v37, %v512_v10 }
  0xba   : > { %v536_v18 = vmax.f32 %v513_v14, 0.0 }
  0xbc   : > { %v546_v19 = vpack.c.bf16 %v536_v18, %v535_v17  ;;  %v1670_v18 = vld [vmem:[%s2123_s7 + $0x30] sm:$0xff] }
  0xbf   : > { %v515_v16 = vpop.f32.mrf.mxu2 }
  0xc0   : > { %v516_v23 = vadd.f32 %v1918_v37, %v515_v16  ;;  %v1671_v16 = vld [vmem:[%s2123_s7 + $0x38] sm:$0xff] }
  0xc1   : > { %899 = vmatpush.bf16.msrb.mxu3 %v1671_v16 }
  0xc2   : > { %v537_v26 = vmax.f32 %v516_v23, 0.0  ;;  %v1668_v23 = vld [vmem:[%s2123_s7 + $0x20] sm:$0xff] }
  0xc5   : > { %900 = vmatpush.bf16.msrb.mxu3 %v1670_v18 }
  0xc7   : > { %635 = vmatmul.bf16.gmra.mxu1 %v543_v58  ;;  %v517_v22 = vpop.f32.mrf.mxu2 }
  0xc8   : > { %v518_v24 = vadd.f32 %v1918_v37, %v517_v22 }
  0xca   : > { %v538_v27 = vmax.f32 %v518_v24, 0.0 }
  0xcc   : > { %v547_v28 = vpack.c.bf16 %v538_v27, %v537_v26 }
  0xd7   : > { %640 = vmatmul.bf16.gmra.mxu1 %v544_v2 }
  0xe7   : > { %645 = vmatmul.bf16.gmra.mxu1 %v545_v9 }
  0xf7   : > { %650 = vmatmul.bf16.gmra.mxu1 %v546_v19  ;;  %v1669_v19 = vld [vmem:[%s2123_s7 + $0x28] sm:$0xff] }
  0xf8   : > { %901 = vmatpush.bf16.msrb.mxu3 %v1669_v19  ;;  %v1678_v19 = vld [vmem:[%s2125_s9 + $0x30] sm:$0xff] }
  0xfc   : > { %902 = vmatpush.bf16.msrb.mxu3 %v1668_v23 }
 0x107   : > { %655 = vmatmul.bf16.gmra.mxu1 %v547_v28  ;;  %v1667_v28 = vld [vmem:[%s2123_s7 + $0x18] sm:$0xff] }
 0x108   : > { %903 = vmatpush.bf16.msrb.mxu3 %v1667_v28  ;;  %v1675_v28 = vld [vmem:[%s2125_s9 + $0x18] sm:$0xff] }
 0x10c   : > { %904 = vmatpush.bf16.msrb.mxu3 %v1666_v29 }
 0x110   : > { %905 = vmatpush.bf16.msrb.mxu3 %v1665_v32 }
 0x117   : > { %660 = vmatmul.bf16.gmra.mxu1 %v548_v36  ;;  %v1664_v36 = vld [vmem:[%s2123_s7] sm:$0xff] }
 0x118   : > { %906 = vmatpush.bf16.msrb.mxu3 %v1664_v36 }
 0x124   : > { %v626_v38 = vpop.f32.mrf.mxu1 }
 0x125   : > { %v627_v40 = vadd.f32 %v1963_v39, %v626_v38 }
 0x127   : > { %v666_v42 = vmax.f32 %v627_v40, 0.0 }
 0x12c   : > { %v628_v41 = vpop.f32.mrf.mxu1 }
 0x12d   : > { %v629_v37 = vadd.f32 %v1963_v39, %v628_v41  ;;  %v2008_v41 = vld [vmem:[%s2122_s6] ss:$0 sm:$0xff] }
 0x12f   : > { %v667_v43 = vmax.f32 %v629_v37, 0.0 }
 0x131   : > { %v682_v44 = vpack.c.bf16 %v667_v43, %v666_v42 }
 0x133   : > { %766 = vmatmul.bf16.vlgmr.msrb.gmra.mxu2 %v682_v44 }
 0x134   : > { %v631_v45 = vpop.f32.mrf.mxu1 }
 0x135   : > { %v632_v46 = vadd.f32 %v1963_v39, %v631_v45 }
 0x137   : > { %v668_v49 = vmax.f32 %v632_v46, 0.0 }
 0x13c   : > { %v633_v47 = vpop.f32.mrf.mxu1 }
 0x13d   : > { %v634_v48 = vadd.f32 %v1963_v39, %v633_v47 }
 0x13f   : > { %v669_v50 = vmax.f32 %v634_v48, 0.0 }
 0x141   : > { %v683_v51 = vpack.c.bf16 %v669_v50, %v668_v49 }
 0x143   : > { %771 = vmatmul.bf16.gmra.mxu2 %v683_v51 }
 0x144   : > { %v636_v52 = vpop.f32.mrf.mxu1 }
 0x145   : > { %v637_v53 = vadd.f32 %v1963_v39, %v636_v52 }
 0x147   : > { %v670_v56 = vmax.f32 %v637_v53, 0.0 }
 0x14c   : > { %v638_v54 = vpop.f32.mrf.mxu1 }
 0x14d   : > { %v639_v55 = vadd.f32 %v1963_v39, %v638_v54 }
 0x14f   : > { %v671_v57 = vmax.f32 %v639_v55, 0.0 }
 0x151   : > { %v684_v58 = vpack.c.bf16 %v671_v57, %v670_v56 }
 0x153   : > { %776 = vmatmul.bf16.gmra.mxu2 %v684_v58 }
 0x154   : > { %v641_v59 = vpop.f32.mrf.mxu1 }
 0x155   : > { %v642_v60 = vadd.f32 %v1963_v39, %v641_v59 }
 0x157   : > { %v672_v63 = vmax.f32 %v642_v60, 0.0 }
 0x15c   : > { %v643_v61 = vpop.f32.mrf.mxu1 }
 0x15d   : > { %v644_v62 = vadd.f32 %v1963_v39, %v643_v61 }
 0x15f   : > { %v673_v0 = vmax.f32 %v644_v62, 0.0 }
 0x161   : > { %v685_v1 = vpack.c.bf16 %v673_v0, %v672_v63 }
 0x163   : > { %781 = vmatmul.bf16.gmra.mxu2 %v685_v1 }
 0x164   : > { %v646_v2 = vpop.f32.mrf.mxu1 }
 0x165   : > { %v647_v3 = vadd.f32 %v1963_v39, %v646_v2 }
 0x167   : > { %v674_v6 = vmax.f32 %v647_v3, 0.0 }
 0x16c   : > { %v648_v4 = vpop.f32.mrf.mxu1 }
 0x16d   : > { %v649_v5 = vadd.f32 %v1963_v39, %v648_v4 }
 0x16f   : > { %v675_v7 = vmax.f32 %v649_v5, 0.0 }
 0x171   : > { %v686_v8 = vpack.c.bf16 %v675_v7, %v674_v6 }
 0x173   : > { %786 = vmatmul.bf16.gmra.mxu2 %v686_v8 }
 0x174   : > { %v651_v9 = vpop.f32.mrf.mxu1 }
 0x175   : > { %v652_v10 = vadd.f32 %v1963_v39, %v651_v9 }
 0x177   : > { %v676_v13 = vmax.f32 %v652_v10, 0.0 }
 0x17c   : > { %v653_v11 = vpop.f32.mrf.mxu1 }
 0x17d   : > { %v654_v12 = vadd.f32 %v1963_v39, %v653_v11 }
 0x17f   : > { %v677_v14 = vmax.f32 %v654_v12, 0.0 }
 0x181   : > { %v687_v15 = vpack.c.bf16 %v677_v14, %v676_v13 }
 0x183   : > { %791 = vmatmul.bf16.gmra.mxu2 %v687_v15 }
 0x184   : > { %v656_v17 = vpop.f32.mrf.mxu1 }
 0x185   : > { %v657_v20 = vadd.f32 %v1963_v39, %v656_v17  ;;  %v1679_v17 = vld [vmem:[%s2125_s9 + $0x38] sm:$0xff] }
 0x186   : > { %1040 = vmatpush.bf16.msrb.mxu0 %v1679_v17 }
 0x187   : > { %v678_v24 = vmax.f32 %v657_v20, 0.0  ;;  %v1677_v20 = vld [vmem:[%s2125_s9 + $0x28] sm:$0xff] }
 0x18a   : > { %1041 = vmatpush.bf16.msrb.mxu0 %v1678_v19 }
 0x18c   : > { %v658_v21 = vpop.f32.mrf.mxu1 }
 0x18d   : > { %v659_v22 = vadd.f32 %v1963_v39, %v658_v21 }
 0x18e   : > { %1042 = vmatpush.bf16.msrb.mxu0 %v1677_v20 }
 0x18f   : > { %v679_v25 = vmax.f32 %v659_v22, 0.0 }
 0x191   : > { %v688_v26 = vpack.c.bf16 %v679_v25, %v678_v24  ;;  %v1676_v24 = vld [vmem:[%s2125_s9 + $0x20] sm:$0xff] }
 0x192   : > { %1043 = vmatpush.bf16.msrb.mxu0 %v1676_v24 }
 0x193   : > { %796 = vmatmul.bf16.gmra.mxu2 %v688_v26 }
 0x194   : > { %v661_v27 = vpop.f32.mrf.mxu1 }
 0x195   : > { %v662_v30 = vadd.f32 %v1963_v39, %v661_v27 }
 0x196   : > { %1044 = vmatpush.bf16.msrb.mxu0 %v1675_v28 }
 0x197   : > { %v680_v34 = vmax.f32 %v662_v30, 0.0  ;;  %v1674_v30 = vld [vmem:[%s2125_s9 + $0x10] sm:$0xff] }
 0x19a   : > { %1045 = vmatpush.bf16.msrb.mxu0 %v1674_v30 }
 0x19c   : > { %v663_v31 = vpop.f32.mrf.mxu1 }
 0x19d   : > { %v664_v33 = vadd.f32 %v1963_v39, %v663_v31  ;;  %v1673_v31 = vld [vmem:[%s2125_s9 + $0x8] sm:$0xff] }
 0x19e   : > { %1046 = vmatpush.bf16.msrb.mxu0 %v1673_v31 }
 0x19f   : > { %v681_v35 = vmax.f32 %v664_v33, 0.0 }
 0x1a1   : > { %v689_v38 = vpack.c.bf16 %v681_v35, %v680_v34 }
 0x1a3   : > { %801 = vmatmul.bf16.gmra.mxu2 %v689_v38  ;;  %v1672_v38 = vld [vmem:[%s2125_s9] sm:$0xff] }
 0x1a4   : > { %1047 = vmatpush.bf16.msrb.mxu0 %v1672_v38 }
 0x1b6   : > { %v767_v40 = vpop.f32.mrf.mxu2 }
 0x1b7   : > { %v768_v37 = vadd.f32 %v2008_v41, %v767_v40 }
 0x1b9   : > { %v807_v43 = vmax.f32 %v768_v37, 0.0 }
 0x1be   : > { %v769_v42 = vpop.f32.mrf.mxu2 }
 0x1bf   : > { %v770_v39 = vadd.f32 %v2008_v41, %v769_v42  ;;  %v1703_v42 = vld [vmem:[%s2124_s8] ss:$0 sm:$0xff] }
 0x1c1   : > { %v808_v44 = vmax.f32 %v770_v39, 0.0 }
 0x1c3   : > { %v823_v45 = vpack.c.bf16 %v808_v44, %v807_v43 }
 0x1c5   : > { %907 = vmatmul.bf16.vlgmr.msrb.gmra.mxu3 %v823_v45 }
 0x1c6   : > { %v772_v46 = vpop.f32.mrf.mxu2 }
 0x1c7   : > { %v773_v47 = vadd.f32 %v2008_v41, %v772_v46 }
 0x1c9   : > { %v809_v50 = vmax.f32 %v773_v47, 0.0 }
 0x1ce   : > { %v774_v48 = vpop.f32.mrf.mxu2 }
 0x1cf   : > { %v775_v49 = vadd.f32 %v2008_v41, %v774_v48 }
 0x1d1   : > { %v810_v51 = vmax.f32 %v775_v49, 0.0 }
 0x1d3   : > { %v824_v52 = vpack.c.bf16 %v810_v51, %v809_v50 }
 0x1d5   : > { %912 = vmatmul.bf16.gmra.mxu3 %v824_v52 }
 0x1d6   : > { %v777_v53 = vpop.f32.mrf.mxu2 }
 0x1d7   : > { %v778_v54 = vadd.f32 %v2008_v41, %v777_v53 }
 0x1d9   : > { %v811_v57 = vmax.f32 %v778_v54, 0.0 }
 0x1de   : > { %v779_v55 = vpop.f32.mrf.mxu2 }
 0x1df   : > { %v780_v56 = vadd.f32 %v2008_v41, %v779_v55 }
 0x1e1   : > { %v812_v58 = vmax.f32 %v780_v56, 0.0 }
 0x1e3   : > { %v825_v59 = vpack.c.bf16 %v812_v58, %v811_v57 }
 0x1e5   : > { %917 = vmatmul.bf16.gmra.mxu3 %v825_v59 }
 0x1e6   : > { %v782_v60 = vpop.f32.mrf.mxu2 }
 0x1e7   : > { %v783_v61 = vadd.f32 %v2008_v41, %v782_v60 }
 0x1e9   : > { %v813_v0 = vmax.f32 %v783_v61, 0.0 }
 0x1ee   : > { %v784_v62 = vpop.f32.mrf.mxu2 }
 0x1ef   : > { %v785_v63 = vadd.f32 %v2008_v41, %v784_v62 }
 0x1f1   : > { %v814_v1 = vmax.f32 %v785_v63, 0.0 }
 0x1f3   : > { %v826_v2 = vpack.c.bf16 %v814_v1, %v813_v0 }
 0x1f5   : > { %922 = vmatmul.bf16.gmra.mxu3 %v826_v2 }
 0x1f6   : > { %v787_v3 = vpop.f32.mrf.mxu2 }
 0x1f7   : > { %v788_v4 = vadd.f32 %v2008_v41, %v787_v3 }
 0x1f9   : > { %v815_v7 = vmax.f32 %v788_v4, 0.0 }
 0x1fe   : > { %v789_v5 = vpop.f32.mrf.mxu2 }
 0x1ff   : > { %v790_v6 = vadd.f32 %v2008_v41, %v789_v5 }
 0x201   : > { %v816_v8 = vmax.f32 %v790_v6, 0.0 }
 0x203   : > { %v827_v9 = vpack.c.bf16 %v816_v8, %v815_v7 }
 0x205   : > { %927 = vmatmul.bf16.gmra.mxu3 %v827_v9 }
 0x206   : > { %v792_v10 = vpop.f32.mrf.mxu2 }
 0x207   : > { %v793_v11 = vadd.f32 %v2008_v41, %v792_v10 }
 0x209   : > { %v817_v14 = vmax.f32 %v793_v11, 0.0 }
 0x20e   : > { %v794_v12 = vpop.f32.mrf.mxu2 }
 0x20f   : > { %v795_v13 = vadd.f32 %v2008_v41, %v794_v12 }
 0x211   : > { %v818_v15 = vmax.f32 %v795_v13, 0.0 }
 0x213   : > { %v828_v16 = vpack.c.bf16 %v818_v15, %v817_v14 }
 0x215   : > { %932 = vmatmul.bf16.gmra.mxu3 %v828_v16 }
 0x216   : > { %v797_v18 = vpop.f32.mrf.mxu2 }
 0x217   : > { %v798_v21 = vadd.f32 %v2008_v41, %v797_v18 }
 0x219   : > { %v819_v25 = vmax.f32 %v798_v21, 0.0 }
 0x21e   : > { %v799_v22 = vpop.f32.mrf.mxu2 }
 0x21f   : > { %v800_v23 = vadd.f32 %v2008_v41, %v799_v22 }
 0x221   : > { %v820_v26 = vmax.f32 %v800_v23, 0.0 }
 0x223   : > { %v829_v27 = vpack.c.bf16 %v820_v26, %v819_v25 }
 0x225   : > { %937 = vmatmul.bf16.gmra.mxu3 %v829_v27 }
 0x226   : > { %v802_v29 = vpop.f32.mrf.mxu2 }
 0x227   : > { %v803_v32 = vadd.f32 %v2008_v41, %v802_v29 }
 0x229   : > { %v821_v35 = vmax.f32 %v803_v32, 0.0  ;;  %v2056_v32 = vld [vmem:[%s2126_s10] ss:$0 sm:$0xff] }
 0x22e   : > { %v804_v33 = vpop.f32.mrf.mxu2 }
 0x22f   : > { %v805_v34 = vadd.f32 %v2008_v41, %v804_v33 }
 0x231   : > { %v822_v36 = vmax.f32 %v805_v34, 0.0 }
 0x233   : > { %v830_v40 = vpack.c.bf16 %v822_v36, %v821_v35 }
 0x235   : > { %942 = vmatmul.bf16.gmra.mxu3 %v830_v40 }
 0x248   : > { %v908_v37 = vpop.f32.mrf.mxu3 }
 0x249   : > { %v909_v39 = vadd.f32 %v1703_v42, %v908_v37 }
 0x24b   : > { %v948_v45 = vmax.f32 %v909_v39, 0.0 }
 0x250   : > { %v910_v43 = vpop.f32.mrf.mxu3 }
 0x251   : > { %v911_v44 = vadd.f32 %v1703_v42, %v910_v43 }
 0x253   : > { %v949_v41 = vmax.f32 %v911_v44, 0.0 }
 0x255   : > { %v964_v46 = vpack.c.bf16 %v949_v41, %v948_v45 }
 0x257   : > { %1048 = vmatmul.bf16.vlgmr.msrb.gmra.mxu0 %v964_v46 }
 0x258   : > { %v913_v47 = vpop.f32.mrf.mxu3 }
 0x259   : > { %v914_v48 = vadd.f32 %v1703_v42, %v913_v47 }
 0x25b   : > { %v950_v51 = vmax.f32 %v914_v48, 0.0 }
 0x260   : > { %v915_v49 = vpop.f32.mrf.mxu3 }
 0x261   : > { %v916_v50 = vadd.f32 %v1703_v42, %v915_v49 }
 0x263   : > { %v951_v52 = vmax.f32 %v916_v50, 0.0 }
 0x265   : > { %v965_v53 = vpack.c.bf16 %v951_v52, %v950_v51 }
 0x267   : > { %1053 = vmatmul.bf16.gmra.mxu0 %v965_v53 }
 0x268   : > { %v918_v54 = vpop.f32.mrf.mxu3 }
 0x269   : > { %v919_v55 = vadd.f32 %v1703_v42, %v918_v54 }
 0x26b   : > { %v952_v58 = vmax.f32 %v919_v55, 0.0 }
 0x270   : > { %v920_v56 = vpop.f32.mrf.mxu3 }
 0x271   : > { %v921_v57 = vadd.f32 %v1703_v42, %v920_v56 }
 0x273   : > { %v953_v59 = vmax.f32 %v921_v57, 0.0 }
 0x275   : > { %v966_v60 = vpack.c.bf16 %v953_v59, %v952_v58 }
 0x277   : > { %1058 = vmatmul.bf16.gmra.mxu0 %v966_v60 }
 0x278   : > { %v923_v61 = vpop.f32.mrf.mxu3 }
 0x279   : > { %v924_v62 = vadd.f32 %v1703_v42, %v923_v61 }
 0x27b   : > { %v954_v1 = vmax.f32 %v924_v62, 0.0 }
 0x280   : > { %v925_v63 = vpop.f32.mrf.mxu3 }
 0x281   : > { %v926_v0 = vadd.f32 %v1703_v42, %v925_v63 }
 0x283   : > { %v955_v2 = vmax.f32 %v926_v0, 0.0 }
 0x285   : > { %v967_v3 = vpack.c.bf16 %v955_v2, %v954_v1 }
 0x287   : > { %1063 = vmatmul.bf16.gmra.mxu0 %v967_v3 }
 0x288   : > { %v928_v4 = vpop.f32.mrf.mxu3 }
 0x289   : > { %v929_v5 = vadd.f32 %v1703_v42, %v928_v4 }
 0x28b   : > { %v956_v8 = vmax.f32 %v929_v5, 0.0 }
 0x290   : > { %v930_v6 = vpop.f32.mrf.mxu3 }
 0x291   : > { %v931_v7 = vadd.f32 %v1703_v42, %v930_v6 }
 0x293   : > { %v957_v9 = vmax.f32 %v931_v7, 0.0 }
 0x295   : > { %v968_v10 = vpack.c.bf16 %v957_v9, %v956_v8 }
 0x297   : > { %1068 = vmatmul.bf16.gmra.mxu0 %v968_v10 }
 0x298   : > { %v933_v11 = vpop.f32.mrf.mxu3 }
 0x299   : > { %v934_v12 = vadd.f32 %v1703_v42, %v933_v11 }
 0x29b   : > { %v958_v15 = vmax.f32 %v934_v12, 0.0 }
 0x2a0   : > { %v935_v13 = vpop.f32.mrf.mxu3 }
 0x2a1   : > { %v936_v14 = vadd.f32 %v1703_v42, %v935_v13 }
 0x2a3   : > { %v959_v16 = vmax.f32 %v936_v14, 0.0 }
 0x2a5   : > { %v969_v17 = vpack.c.bf16 %v959_v16, %v958_v15 }
 0x2a7   : > { %1073 = vmatmul.bf16.gmra.mxu0 %v969_v17 }
 0x2a8   : > { %v938_v18 = vpop.f32.mrf.mxu3 }
 0x2a9   : > { %v939_v19 = vadd.f32 %v1703_v42, %v938_v18 }
 0x2ab   : > { %v960_v22 = vmax.f32 %v939_v19, 0.0 }
 0x2b0   : > { %v940_v20 = vpop.f32.mrf.mxu3 }
 0x2b1   : > { %v941_v21 = vadd.f32 %v1703_v42, %v940_v20 }
 0x2b3   : > { %v961_v23 = vmax.f32 %v941_v21, 0.0 }
 0x2b5   : > { %v970_v24 = vpack.c.bf16 %v961_v23, %v960_v22 }
 0x2b7   : > { %1078 = vmatmul.bf16.gmra.mxu0 %v970_v24 }
 0x2b8   : > { %v943_v25 = vpop.f32.mrf.mxu3 }
 0x2b9   : > { %v944_v26 = vadd.f32 %v1703_v42, %v943_v25 }
 0x2bb   : > { %v962_v29 = vmax.f32 %v944_v26, 0.0 }
 0x2c0   : > { %v945_v27 = vpop.f32.mrf.mxu3 }
 0x2c1   : > { %v946_v28 = vadd.f32 %v1703_v42, %v945_v27 }
 0x2c3   : > { %v963_v30 = vmax.f32 %v946_v28, 0.0 }
 0x2c5   : > { %v971_v31 = vpack.c.bf16 %v963_v30, %v962_v29 }
 0x2c7   : > { %1083 = vmatmul.bf16.gmra.mxu0 %v971_v31 }
 0x2d4   : > { %v1049_v33 = vpop.f32.mrf.mxu0 }
 0x2d5   : > { %v1050_v34 = vadd.f32 %v2056_v32, %v1049_v33 }
 0x2d7   : > { %v1626_v35 = vmul.f32 -1.442695, %v1050_v34 }
 0x2d9   : > { %1705 = vpow2.f32 %v1626_v35 }
 0x2dc   : > { %v1051_v36 = vpop.f32.mrf.mxu0 }
 0x2dd   : > { %v1052_v38 = vadd.f32 %v2056_v32, %v1051_v36 }
 0x2df   : > { %v1706_v40 = vpop.eup %1705  ;;  %v1627_v37 = vmul.f32 -1.442695, %v1052_v38 }
 0x2e0   : > { %v1137_v42 = vadd.f32 1.0, %v1706_v40 }
 0x2e1   : > { %1707 = vpow2.f32 %v1627_v37 }
 0x2e2   : > { %1709 = vrcp.f32 %v1137_v42  ;;  %v1164_v49 = vand.u32 2147483648, %v1137_v42  ;;  %v1162_v52 = vand.u32 2147483647, %v1137_v42  ;;  %vm1158_vm2 = vweird.f32 %v1137_v42 }
 0x2e4   : > { %v1054_v39 = vpop.f32.mrf.mxu0  ;;  %v1165_v58 = vor.u32 1.1754944e-38, %v1164_v49  ;;  %vm1163_vm4 = vcmp.eq.f32.partialorder %v1162_v52, 8.507059e+37 }
 0x2e5   : > { %v1055_v43 = vadd.f32 %v2056_v32, %v1054_v39 }
 0x2e7   : > { %v1708_v44 = vpop.eup %1707  ;;  %v1628_v45 = vmul.f32 -1.442695, %v1055_v43 }
 0x2e8   : > { %v1710_v41 = vpop.eup %1709  ;;  %v1138_v46 = vadd.f32 1.0, %v1708_v44 }
 0x2e9   : > { %v1154_v47 = vmul.f32 %v1710_v41, %v1137_v42  ;;  %1711 = vpow2.f32 %v1628_v45  ;;  %vm1159_vm1 = vweird.f32 %v1710_v41 }
 0x2ea   : > { %1713 = vrcp.f32 %v1138_v46  ;;  %vm1160_vm3 = vmor %vm1158_vm2, %vm1159_vm1  ;;  %v1179_v0 = vand.u32 2147483648, %v1138_v46  ;;  %v1177_v3 = vand.u32 2147483647, %v1138_v46  ;;  %vm1173_vm6 = vweird.f32 %v1138_v46 }
 0x2eb   : > { %v1155_v48 = vsub.f32 1.0, %v1154_v47 }
 0x2ec   : > { %v1056_v50 = vpop.f32.mrf.mxu0  ;;  %v1180_v9 = vor.u32 1.1754944e-38, %v1179_v0  ;;  %vm1178_vm8 = vcmp.eq.f32.partialorder %v1177_v3, 8.507059e+37 }
 0x2ed   : > { %v1156_v51 = vmul.f32 %v1710_v41, %v1155_v48  ;;  %v1057_v53 = vadd.f32 %v2056_v32, %v1056_v50 }
 0x2ef   : > { %v1712_v54 = vpop.eup %1711  ;;  %v1157_v55 = vadd.f32 %v1710_v41, %v1156_v51  ;;  %v1629_v56 = vmul.f32 -1.442695, %v1057_v53 }
 0x2f0   : > { %v1714_v57 = vpop.eup %1713  ;;  %v1139_v59 = vadd.f32 1.0, %v1712_v54 }
 0x2f1   : > { %v1161_v60 = vsel %vm1160_vm3, %v1710_v41, %v1157_v55  ;;  %v1169_v61 = vmul.f32 %v1714_v57, %v1138_v46  ;;  %1715 = vpow2.f32 %v1629_v56  ;;  %vm1174_vm5 = vweird.f32 %v1714_v57 }
 0x2f2   : > { %v1166_v62 = vsel %vm1163_vm4, %v1165_v58, %v1161_v60  ;;  %1717 = vrcp.f32 %v1139_v59  ;;  %vm1175_vm7 = vmor %vm1173_vm6, %vm1174_vm5  ;;  %v1194_v15 = vand.u32 2147483648, %v1139_v59  ;;  %v1192_v18 = vand.u32 2147483647, %v1139_v59 }
 0x2f3   : > { %1393 = vst.msk [vmem:[%s2067_s28] sm:$0xff] %vm451_vm0, %v1166_v62  ;;  %v1170_v63 = vsub.f32 1.0, %v1169_v61  ;;  %vm1188_vm10 = vweird.f32 %v1139_v59 }
 0x2f4   : > { %v1059_v1 = vpop.f32.mrf.mxu0  ;;  %v1195_v24 = vor.u32 1.1754944e-38, %v1194_v15  ;;  %vm1193_vm12 = vcmp.eq.f32.partialorder %v1192_v18, 8.507059e+37 }
 0x2f5   : > { %v1171_v2 = vmul.f32 %v1714_v57, %v1170_v63  ;;  %v1060_v4 = vadd.f32 %v2056_v32, %v1059_v1 }
 0x2f7   : > { %v1716_v5 = vpop.eup %1715  ;;  %v1172_v6 = vadd.f32 %v1714_v57, %v1171_v2  ;;  %v1630_v7 = vmul.f32 -1.442695, %v1060_v4 }
 0x2f8   : > { %v1718_v8 = vpop.eup %1717  ;;  %v1140_v10 = vadd.f32 1.0, %v1716_v5 }
 0x2f9   : > { %v1176_v11 = vsel %vm1175_vm7, %v1714_v57, %v1172_v6  ;;  %v1184_v12 = vmul.f32 %v1718_v8, %v1139_v59  ;;  %1719 = vpow2.f32 %v1630_v7  ;;  %vm1189_vm9 = vweird.f32 %v1718_v8 }
 0x2fa   : > { %v1181_v13 = vsel %vm1178_vm8, %v1180_v9, %v1176_v11  ;;  %1721 = vrcp.f32 %v1140_v10  ;;  %vm1190_vm11 = vmor %vm1188_vm10, %vm1189_vm9  ;;  %v1209_v30 = vand.u32 2147483648, %v1140_v10  ;;  %v1207_v34 = vand.u32 2147483647, %v1140_v10 }
 0x2fb   : > { %1394 = vst.msk [vmem:[%s2067_s28 + $0x8] sm:$0xff] %vm451_vm0, %v1181_v13  ;;  %v1185_v14 = vsub.f32 1.0, %v1184_v12  ;;  %vm1203_vm14 = vweird.f32 %v1140_v10 }
 0x2fc   : > { %v1061_v16 = vpop.f32.mrf.mxu0  ;;  %v1210_v42 = vor.u32 1.1754944e-38, %v1209_v30  ;;  %vm1208_vm1 = vcmp.eq.f32.partialorder %v1207_v34, 8.507059e+37 }
 0x2fd   : > { %v1186_v17 = vmul.f32 %v1718_v8, %v1185_v14  ;;  %v1062_v19 = vadd.f32 %v2056_v32, %v1061_v16 }
 0x2ff   : > { %v1720_v20 = vpop.eup %1719  ;;  %v1187_v21 = vadd.f32 %v1718_v8, %v1186_v17  ;;  %v1631_v22 = vmul.f32 -1.442695, %v1062_v19 }
 0x300   : > { %v1722_v23 = vpop.eup %1721  ;;  %v1141_v25 = vadd.f32 1.0, %v1720_v20 }
 0x301   : > { %v1191_v26 = vsel %vm1190_vm11, %v1718_v8, %v1187_v21  ;;  %v1199_v27 = vmul.f32 %v1722_v23, %v1140_v10  ;;  %1723 = vpow2.f32 %v1631_v22  ;;  %vm1204_vm13 = vweird.f32 %v1722_v23 }
 0x302   : > { %v1196_v28 = vsel %vm1193_vm12, %v1195_v24, %v1191_v26  ;;  %1725 = vrcp.f32 %v1141_v25  ;;  %vm1205_vm15 = vmor %vm1203_vm14, %vm1204_vm13  ;;  %v1224_v46 = vand.u32 2147483648, %v1141_v25  ;;  %v1222_v49 = vand.u32 2147483647, %v1141_v25 }
 0x303   : > { %1395 = vst.msk [vmem:[%s2067_s28 + $0x10] sm:$0xff] %vm451_vm0, %v1196_v28  ;;  %v1200_v29 = vsub.f32 1.0, %v1199_v27  ;;  %vm1218_vm3 = vweird.f32 %v1141_v25 }
 0x304   : > { %v1064_v31 = vpop.f32.mrf.mxu0  ;;  %v1225_v55 = vor.u32 1.1754944e-38, %v1224_v46  ;;  %vm1223_vm5 = vcmp.eq.f32.partialorder %v1222_v49, 8.507059e+37 }
 0x305   : > { %v1201_v33 = vmul.f32 %v1722_v23, %v1200_v29  ;;  %v1065_v35 = vadd.f32 %v2056_v32, %v1064_v31 }
 0x307   : > { %v1724_v36 = vpop.eup %1723  ;;  %v1202_v38 = vadd.f32 %v1722_v23, %v1201_v33  ;;  %v1632_v40 = vmul.f32 -1.442695, %v1065_v35 }
 0x308   : > { %v1726_v37 = vpop.eup %1725  ;;  %v1142_v39 = vadd.f32 1.0, %v1724_v36 }
 0x309   : > { %v1206_v43 = vsel %vm1205_vm15, %v1722_v23, %v1202_v38  ;;  %v1214_v44 = vmul.f32 %v1726_v37, %v1141_v25  ;;  %1727 = vpow2.f32 %v1632_v40  ;;  %vm1219_vm2 = vweird.f32 %v1726_v37 }
 0x30a   : > { %v1211_v45 = vsel %vm1208_vm1, %v1210_v42, %v1206_v43  ;;  %1729 = vrcp.f32 %v1142_v39  ;;  %vm1220_vm4 = vmor %vm1218_vm3, %vm1219_vm2  ;;  %v1239_v61 = vand.u32 2147483648, %v1142_v39  ;;  %v1237_v0 = vand.u32 2147483647, %v1142_v39 }
 0x30b   : > { %1396 = vst.msk [vmem:[%s2067_s28 + $0x18] sm:$0xff] %vm451_vm0, %v1211_v45  ;;  %v1215_v41 = vsub.f32 1.0, %v1214_v44  ;;  %vm1233_vm7 = vweird.f32 %v1142_v39 }
 0x30c   : > { %v1066_v47 = vpop.f32.mrf.mxu0  ;;  %v1240_v6 = vor.u32 1.1754944e-38, %v1239_v61  ;;  %vm1238_vm9 = vcmp.eq.f32.partialorder %v1237_v0, 8.507059e+37 }
 0x30d   : > { %v1216_v48 = vmul.f32 %v1726_v37, %v1215_v41  ;;  %v1067_v50 = vadd.f32 %v2056_v32, %v1066_v47 }
 0x30f   : > { %v1728_v51 = vpop.eup %1727  ;;  %v1217_v52 = vadd.f32 %v1726_v37, %v1216_v48  ;;  %v1633_v53 = vmul.f32 -1.442695, %v1067_v50 }
 0x310   : > { %v1730_v54 = vpop.eup %1729  ;;  %v1143_v56 = vadd.f32 1.0, %v1728_v51 }
 0x311   : > { %v1221_v57 = vsel %vm1220_vm4, %v1726_v37, %v1217_v52  ;;  %v1229_v58 = vmul.f32 %v1730_v54, %v1142_v39  ;;  %1731 = vpow2.f32 %v1633_v53  ;;  %vm1234_vm6 = vweird.f32 %v1730_v54 }
 0x312   : > { %v1226_v59 = vsel %vm1223_vm5, %v1225_v55, %v1221_v57  ;;  %1733 = vrcp.f32 %v1143_v56  ;;  %vm1235_vm8 = vmor %vm1233_vm7, %vm1234_vm6  ;;  %v1254_v12 = vand.u32 2147483648, %v1143_v56  ;;  %v1252_v15 = vand.u32 2147483647, %v1143_v56 }
 0x313   : > { %1397 = vst.msk [vmem:[%s2067_s28 + $0x20] sm:$0xff] %vm451_vm0, %v1226_v59  ;;  %v1230_v60 = vsub.f32 1.0, %v1229_v58  ;;  %vm1248_vm11 = vweird.f32 %v1143_v56 }
 0x314   : > { %v1069_v62 = vpop.f32.mrf.mxu0  ;;  %v1255_v21 = vor.u32 1.1754944e-38, %v1254_v12  ;;  %vm1253_vm13 = vcmp.eq.f32.partialorder %v1252_v15, 8.507059e+37 }
 0x315   : > { %v1231_v63 = vmul.f32 %v1730_v54, %v1230_v60  ;;  %v1070_v1 = vadd.f32 %v2056_v32, %v1069_v62 }
 0x317   : > { %v1732_v2 = vpop.eup %1731  ;;  %v1232_v3 = vadd.f32 %v1730_v54, %v1231_v63  ;;  %v1634_v4 = vmul.f32 -1.442695, %v1070_v1 }
 0x318   : > { %v1734_v5 = vpop.eup %1733  ;;  %v1144_v7 = vadd.f32 1.0, %v1732_v2 }
 0x319   : > { %v1236_v8 = vsel %vm1235_vm8, %v1730_v54, %v1232_v3  ;;  %v1244_v9 = vmul.f32 %v1734_v5, %v1143_v56  ;;  %1735 = vpow2.f32 %v1634_v4  ;;  %vm1249_vm10 = vweird.f32 %v1734_v5 }
 0x31a   : > { %v1241_v10 = vsel %vm1238_vm9, %v1240_v6, %v1236_v8  ;;  %1737 = vrcp.f32 %v1144_v7  ;;  %vm1250_vm12 = vmor %vm1248_vm11, %vm1249_vm10  ;;  %v1269_v27 = vand.u32 2147483648, %v1144_v7  ;;  %v1267_v30 = vand.u32 2147483647, %v1144_v7 }
 0x31b   : > { %1398 = vst.msk [vmem:[%s2067_s28 + $0x28] sm:$0xff] %vm451_vm0, %v1241_v10  ;;  %v1245_v11 = vsub.f32 1.0, %v1244_v9  ;;  %vm1263_vm15 = vweird.f32 %v1144_v7 }
 0x31c   : > { %v1071_v13 = vpop.f32.mrf.mxu0  ;;  %v1270_v38 = vor.u32 1.1754944e-38, %v1269_v27  ;;  %vm1268_vm2 = vcmp.eq.f32.partialorder %v1267_v30, 8.507059e+37 }
 0x31d   : > { %v1246_v14 = vmul.f32 %v1734_v5, %v1245_v11  ;;  %v1072_v16 = vadd.f32 %v2056_v32, %v1071_v13 }
 0x31f   : > { %v1736_v17 = vpop.eup %1735  ;;  %v1247_v18 = vadd.f32 %v1734_v5, %v1246_v14  ;;  %v1635_v19 = vmul.f32 -1.442695, %v1072_v16 }
 0x320   : > { %v1738_v20 = vpop.eup %1737  ;;  %v1145_v22 = vadd.f32 1.0, %v1736_v17 }
 0x321   : > { %v1251_v23 = vsel %vm1250_vm12, %v1734_v5, %v1247_v18  ;;  %v1259_v24 = vmul.f32 %v1738_v20, %v1144_v7  ;;  %1739 = vpow2.f32 %v1635_v19  ;;  %vm1264_vm14 = vweird.f32 %v1738_v20 }
 0x322   : > { %v1256_v25 = vsel %vm1253_vm13, %v1255_v21, %v1251_v23  ;;  %1741 = vrcp.f32 %v1145_v22  ;;  %vm1265_vm1 = vmor %vm1263_vm15, %vm1264_vm14  ;;  %v1284_v44 = vand.u32 2147483648, %v1145_v22  ;;  %v1282_v46 = vand.u32 2147483647, %v1145_v22 }
 0x323   : > { %1399 = vst.msk [vmem:[%s2067_s28 + $0x30] sm:$0xff] %vm451_vm0, %v1256_v25  ;;  %v1260_v26 = vsub.f32 1.0, %v1259_v24  ;;  %vm1278_vm4 = vweird.f32 %v1145_v22 }
 0x324   : > { %v1074_v28 = vpop.f32.mrf.mxu0  ;;  %v1285_v52 = vor.u32 1.1754944e-38, %v1284_v44  ;;  %vm1283_vm6 = vcmp.eq.f32.partialorder %v1282_v46, 8.507059e+37 }
 0x325   : > { %v1261_v29 = vmul.f32 %v1738_v20, %v1260_v26  ;;  %v1075_v31 = vadd.f32 %v2056_v32, %v1074_v28 }
 0x327   : > { %v1740_v33 = vpop.eup %1739  ;;  %v1262_v34 = vadd.f32 %v1738_v20, %v1261_v29  ;;  %v1636_v35 = vmul.f32 -1.442695, %v1075_v31 }
 0x328   : > { %v1742_v36 = vpop.eup %1741  ;;  %v1146_v40 = vadd.f32 1.0, %v1740_v33 }
 0x329   : > { %v1266_v37 = vsel %vm1265_vm1, %v1738_v20, %v1262_v34  ;;  %v1274_v42 = vmul.f32 %v1742_v36, %v1145_v22  ;;  %1743 = vpow2.f32 %v1636_v35  ;;  %vm1279_vm3 = vweird.f32 %v1742_v36 }
 0x32a   : > { %v1271_v39 = vsel %vm1268_vm2, %v1270_v38, %v1266_v37  ;;  %1745 = vrcp.f32 %v1146_v40  ;;  %vm1280_vm5 = vmor %vm1278_vm4, %vm1279_vm3  ;;  %v1299_v58 = vand.u32 2147483648, %v1146_v40  ;;  %v1297_v61 = vand.u32 2147483647, %v1146_v40 }
 0x32b   : > { %1400 = vst.msk [vmem:[%s2067_s28 + $0x38] sm:$0xff] %vm451_vm0, %v1271_v39  ;;  %v1275_v43 = vsub.f32 1.0, %v1274_v42  ;;  %vm1293_vm8 = vweird.f32 %v1146_v40 }
 0x32c   : > { %v1076_v45 = vpop.f32.mrf.mxu0  ;;  %v1300_v3 = vor.u32 1.1754944e-38, %v1299_v58  ;;  %vm1298_vm10 = vcmp.eq.f32.partialorder %v1297_v61, 8.507059e+37 }
 0x32d   : > { %v1276_v41 = vmul.f32 %v1742_v36, %v1275_v43  ;;  %v1077_v47 = vadd.f32 %v2056_v32, %v1076_v45 }
 0x32f   : > { %v1744_v48 = vpop.eup %1743  ;;  %v1277_v49 = vadd.f32 %v1742_v36, %v1276_v41  ;;  %v1637_v50 = vmul.f32 -1.442695, %v1077_v47 }
 0x330   : > { %v1746_v51 = vpop.eup %1745  ;;  %v1147_v53 = vadd.f32 1.0, %v1744_v48 }
 0x331   : > { %v1281_v54 = vsel %vm1280_vm5, %v1742_v36, %v1277_v49  ;;  %v1289_v55 = vmul.f32 %v1746_v51, %v1146_v40  ;;  %1747 = vpow2.f32 %v1637_v50  ;;  %vm1294_vm7 = vweird.f32 %v1746_v51 }
 0x332   : > { %v1286_v56 = vsel %vm1283_vm6, %v1285_v52, %v1281_v54  ;;  %1749 = vrcp.f32 %v1147_v53  ;;  %vm1295_vm9 = vmor %vm1293_vm8, %vm1294_vm7  ;;  %v1314_v9 = vand.u32 2147483648, %v1147_v53  ;;  %v1312_v12 = vand.u32 2147483647, %v1147_v53 }
 0x333   : > { %1401 = vst.msk [vmem:[%s2067_s28 + $0x40] sm:$0xff] %vm451_vm0, %v1286_v56  ;;  %v1290_v57 = vsub.f32 1.0, %v1289_v55  ;;  %vm1308_vm12 = vweird.f32 %v1147_v53 }
 0x334   : > { %v1079_v59 = vpop.f32.mrf.mxu0  ;;  %v1315_v18 = vor.u32 1.1754944e-38, %v1314_v9  ;;  %vm1313_vm14 = vcmp.eq.f32.partialorder %v1312_v12, 8.507059e+37 }
 0x335   : > { %v1291_v60 = vmul.f32 %v1746_v51, %v1290_v57  ;;  %v1080_v62 = vadd.f32 %v2056_v32, %v1079_v59 }
 0x337   : > { %v1748_v63 = vpop.eup %1747  ;;  %v1292_v0 = vadd.f32 %v1746_v51, %v1291_v60  ;;  %v1638_v1 = vmul.f32 -1.442695, %v1080_v62 }
 0x338   : > { %v1750_v2 = vpop.eup %1749  ;;  %v1148_v4 = vadd.f32 1.0, %v1748_v63 }
 0x339   : > { %v1296_v5 = vsel %vm1295_vm9, %v1746_v51, %v1292_v0  ;;  %v1304_v6 = vmul.f32 %v1750_v2, %v1147_v53  ;;  %1751 = vpow2.f32 %v1638_v1  ;;  %vm1309_vm11 = vweird.f32 %v1750_v2 }
 0x33a   : > { %v1301_v7 = vsel %vm1298_vm10, %v1300_v3, %v1296_v5  ;;  %1753 = vrcp.f32 %v1148_v4  ;;  %vm1310_vm13 = vmor %vm1308_vm12, %vm1309_vm11  ;;  %v1329_v24 = vand.u32 2147483648, %v1148_v4  ;;  %v1327_v27 = vand.u32 2147483647, %v1148_v4 }
 0x33b   : > { %1402 = vst.msk [vmem:[%s2067_s28 + $0x48] sm:$0xff] %vm451_vm0, %v1301_v7  ;;  %v1305_v8 = vsub.f32 1.0, %v1304_v6  ;;  %vm1323_vm1 = vweird.f32 %v1148_v4 }
 0x33c   : > { %v1081_v10 = vpop.f32.mrf.mxu0  ;;  %v1330_v34 = vor.u32 1.1754944e-38, %v1329_v24  ;;  %vm1328_vm3 = vcmp.eq.f32.partialorder %v1327_v27, 8.507059e+37 }
 0x33d   : > { %v1306_v11 = vmul.f32 %v1750_v2, %v1305_v8  ;;  %v1082_v13 = vadd.f32 %v2056_v32, %v1081_v10 }
 0x33f   : > { %v1752_v14 = vpop.eup %1751  ;;  %v1307_v15 = vadd.f32 %v1750_v2, %v1306_v11  ;;  %v1639_v16 = vmul.f32 -1.442695, %v1082_v13 }
 0x340   : > { %v1754_v17 = vpop.eup %1753  ;;  %v1149_v19 = vadd.f32 1.0, %v1752_v14 }
 0x341   : > { %v1311_v20 = vsel %vm1310_vm13, %v1750_v2, %v1307_v15  ;;  %v1319_v21 = vmul.f32 %v1754_v17, %v1148_v4  ;;  %1755 = vpow2.f32 %v1639_v16  ;;  %vm1324_vm15 = vweird.f32 %v1754_v17 }
 0x342   : > { %v1316_v22 = vsel %vm1313_vm14, %v1315_v18, %v1311_v20  ;;  %1757 = vrcp.f32 %v1149_v19  ;;  %vm1325_vm2 = vmor %vm1323_vm1, %vm1324_vm15  ;;  %v1344_v42 = vand.u32 2147483648, %v1149_v19  ;;  %v1342_v44 = vand.u32 2147483647, %v1149_v19 }
 0x343   : > { %1403 = vst.msk [vmem:[%s2067_s28 + $0x50] sm:$0xff] %vm451_vm0, %v1316_v22  ;;  %v1320_v23 = vsub.f32 1.0, %v1319_v21  ;;  %vm1338_vm5 = vweird.f32 %v1149_v19 }
 0x344   : > { %v1084_v25 = vpop.f32.mrf.mxu0  ;;  %v1345_v49 = vor.u32 1.1754944e-38, %v1344_v42  ;;  %vm1343_vm7 = vcmp.eq.f32.partialorder %v1342_v44, 8.507059e+37 }
 0x345   : > { %v1321_v26 = vmul.f32 %v1754_v17, %v1320_v23  ;;  %v1085_v28 = vadd.f32 %v2056_v32, %v1084_v25 }
 0x347   : > { %v1756_v29 = vpop.eup %1755  ;;  %v1322_v30 = vadd.f32 %v1754_v17, %v1321_v26  ;;  %v1640_v31 = vmul.f32 -1.442695, %v1085_v28 }
 0x348   : > { %v1758_v33 = vpop.eup %1757  ;;  %v1150_v35 = vadd.f32 1.0, %v1756_v29 }
 0x349   : > { %v1326_v36 = vsel %vm1325_vm2, %v1754_v17, %v1322_v30  ;;  %v1334_v38 = vmul.f32 %v1758_v33, %v1149_v19  ;;  %1759 = vpow2.f32 %v1640_v31  ;;  %vm1339_vm4 = vweird.f32 %v1758_v33 }
 0x34a   : > { %v1331_v40 = vsel %vm1328_vm3, %v1330_v34, %v1326_v36  ;;  %1761 = vrcp.f32 %v1150_v35  ;;  %vm1340_vm6 = vmor %vm1338_vm5, %vm1339_vm4  ;;  %v1359_v55 = vand.u32 2147483648, %v1150_v35  ;;  %v1357_v56 = vand.u32 2147483647, %v1150_v35 }
 0x34b   : > { %1404 = vst.msk [vmem:[%s2067_s28 + $0x58] sm:$0xff] %vm451_vm0, %v1331_v40  ;;  %v1335_v37 = vsub.f32 1.0, %v1334_v38  ;;  %vm1353_vm9 = vweird.f32 %v1150_v35 }
 0x34c   : > { %v1086_v39 = vpop.f32.mrf.mxu0  ;;  %v1360_v60 = vor.u32 1.1754944e-38, %v1359_v55  ;;  %vm1358_vm11 = vcmp.eq.f32.partialorder %v1357_v56, 8.507059e+37 }
 0x34d   : > { %v1336_v43 = vmul.f32 %v1758_v33, %v1335_v37  ;;  %v1087_v45 = vadd.f32 %v2056_v32, %v1086_v39 }
 0x34f   : > { %v1760_v41 = vpop.eup %1759  ;;  %v1337_v46 = vadd.f32 %v1758_v33, %v1336_v43  ;;  %v1641_v47 = vmul.f32 -1.442695, %v1087_v45 }
 0x350   : > { %v1762_v48 = vpop.eup %1761  ;;  %v1151_v50 = vadd.f32 1.0, %v1760_v41 }
 0x351   : > { %v1341_v51 = vsel %vm1340_vm6, %v1758_v33, %v1337_v46  ;;  %v1349_v52 = vmul.f32 %v1762_v48, %v1150_v35  ;;  %1763 = vpow2.f32 %v1641_v47  ;;  %vm1354_vm8 = vweird.f32 %v1762_v48 }
 0x352   : > { %v1346_v53 = vsel %vm1343_vm7, %v1345_v49, %v1341_v51  ;;  %1765 = vrcp.f32 %v1151_v50  ;;  %vm1355_vm10 = vmor %vm1353_vm9, %vm1354_vm8  ;;  %v1374_v2 = vand.u32 2147483648, %v1151_v50  ;;  %v1372_v4 = vand.u32 2147483647, %v1151_v50 }
 0x353   : > { %1405 = vst.msk [vmem:[%s2067_s28 + $0x60] sm:$0xff] %vm451_vm0, %v1346_v53  ;;  %v1350_v54 = vsub.f32 1.0, %v1349_v52  ;;  %vm1368_vm13 = vweird.f32 %v1151_v50 }
 0x354   : > { %v1375_v7 = vor.u32 1.1754944e-38, %v1374_v2  ;;  %vm1373_vm15 = vcmp.eq.f32.partialorder %v1372_v4, 8.507059e+37 }
 0x355   : > { %v1351_v32 = vmul.f32 %v1762_v48, %v1350_v54 }
 0x357   : > { %v1764_v57 = vpop.eup %1763  ;;  %v1352_v58 = vadd.f32 %v1762_v48, %v1351_v32 }
 0x358   : > { %v1766_v59 = vpop.eup %1765  ;;  %v1152_v61 = vadd.f32 1.0, %v1764_v57 }
 0x359   : > { %v1356_v62 = vsel %vm1355_vm10, %v1762_v48, %v1352_v58  ;;  %v1364_v63 = vmul.f32 %v1766_v59, %v1151_v50  ;;  %vm1369_vm12 = vweird.f32 %v1766_v59 }
 0x35a   : > { %v1361_v0 = vsel %vm1358_vm11, %v1360_v60, %v1356_v62  ;;  %1767 = vrcp.f32 %v1152_v61  ;;  %vm1370_vm14 = vmor %vm1368_vm13, %vm1369_vm12  ;;  %v1389_v12 = vand.u32 2147483648, %v1152_v61  ;;  %v1387_v14 = vand.u32 2147483647, %v1152_v61 }
 0x35b   : > { %1406 = vst.msk [vmem:[%s2067_s28 + $0x68] sm:$0xff] %vm451_vm0, %v1361_v0  ;;  %v1365_v1 = vsub.f32 1.0, %v1364_v63  ;;  %vm1383_vm2 = vweird.f32 %v1152_v61 }
 0x35c   : > { %v1390_v16 = vor.u32 1.1754944e-38, %v1389_v12  ;;  %vm1388_vm4 = vcmp.eq.f32.partialorder %v1387_v14, 8.507059e+37 }
 0x35d   : > { %v1366_v3 = vmul.f32 %v1766_v59, %v1365_v1 }
 0x35f   : > { %v1367_v5 = vadd.f32 %v1766_v59, %v1366_v3 }
 0x360   : > { %v1768_v6 = vpop.eup %1767 }
 0x361   : > { %v1371_v8 = vsel %vm1370_vm14, %v1766_v59, %v1367_v5  ;;  %v1379_v9 = vmul.f32 %v1768_v6, %v1152_v61  ;;  %vm1384_vm1 = vweird.f32 %v1768_v6 }
 0x362   : > { %v1376_v10 = vsel %vm1373_vm15, %v1375_v7, %v1371_v8  ;;  %vm1385_vm3 = vmor %vm1383_vm2, %vm1384_vm1 }
 0x363   : > { %1407 = vst.msk [vmem:[%s2067_s28 + $0x70] sm:$0xff] %vm451_vm0, %v1376_v10  ;;  %v1380_v11 = vsub.f32 1.0, %v1379_v9 }
 0x365   : > { %v1381_v13 = vmul.f32 %v1768_v6, %v1380_v11 }
 0x367   : > { %v1382_v15 = vadd.f32 %v1768_v6, %v1381_v13 }
 0x369   : > { %v1386_v17 = vsel %vm1385_vm3, %v1768_v6, %v1382_v15 }
 0x36a   : > { %v1391_v18 = vsel %vm1388_vm4, %v1390_v16, %v1386_v17 }
 0x36b   : > { %1408 = vst.msk [vmem:[%s2067_s28 + $0x78] sm:$0xff] %vm451_vm0, %v1391_v18 }
 0x36c PF: > { %s21_s17 = sadd.s32 1, %s1775_s17  }
 0x36d   : > { %p18_p4 = scmp.ge.s32.totalorder %s21_s17, 4  }
 0x36f   :  { %20 = sbr.rel (!%p18_p4) target bundleno = 1 (0x1), region = 94 }

</bundles_post_ra>
